<compile_context>
chip_gen: v5e
topology: v5e:2x2
jax: 0.10.0
libtpu: 0.0.40
codegen_flags: <defaults>
</compile_context>

<pallas_src>
import math
import functools

import jax
import jax.numpy as jnp
from jax import lax
from jax.experimental import pallas as pl
from jax.experimental.pallas import tpu as pltpu


def _round_up(n, m):
    return ((n + m - 1) // m) * m


# ----------------------------------------------------------------------------
# Fused Pallas kernel: y = act(norm(conv(x))) for one batch element
# ----------------------------------------------------------------------------

def _conv_norm_act_kernel(x_ref, w_ref, b_ref, g_ref, bt_ref, m_ref, o_ref, *,
                          k, Wp, n_valid, norm, activation, use_bias, eps):
    # x_ref : (1, C_in, Lin)     bf16, flat padded image (row pitch Wp)
    # w_ref : (k*k, C_out, C_in) bf16, per-tap weight matrices
    # b/g/bt: (C_out, 1)         f32
    # m_ref : (1, L)             f32 valid-lane mask
    # o_ref : (1, C_out, L)
    C_out = o_ref.shape[1]
    L = o_ref.shape[2]

    xf = x_ref[0]                                   # (C_in, Lin) bf16
    mask = m_ref[...]                               # (1, L) f32

    # Conv as k*k shifted-window MXU matmuls, f32 accumulation.
    acc = jnp.zeros((C_out, L), jnp.float32)
    for kh in range(k):
        for kw in range(k):
            off = kh * Wp + kw                      # static flat shift
            acc = acc + jnp.dot(w_ref[kh * k + kw], xf[:, off:off + L],
                                preferred_element_type=jnp.float32)

    # Conv bias: cancelled exactly by the instance-norm mean subtraction,
    # so only added when it actually affects the output.
    if use_bias and norm != "in":
        acc = acc + b_ref[...]

    if norm == "in":
        # InstanceNorm2d (training-mode instance stats, biased var), folded
        # into a single scale/shift affine.  Padded lanes are masked out.
        inv_n = 1.0 / n_valid
        am = acc * mask
        mean = jnp.sum(am, axis=1, keepdims=True) * inv_n          # (C_out,1)
        ex2 = jnp.sum(am * acc, axis=1, keepdims=True) * inv_n     # E[x^2]
        var = ex2 - mean * mean
        scale = g_ref[...] * lax.rsqrt(var + eps)
        shift = bt_ref[...] - mean * scale
        y = acc * scale + shift
        # TODO(synk): running_mean/running_var buffer updates (stateful) are
        # not part of the functional forward and are not implemented.
    elif norm == "ln":
        # GroupNorm(1, C): per-sample stats over all C*H*W valid elements.
        inv_n = 1.0 / (n_valid * C_out)
        am = acc * mask
        mean = jnp.sum(am, keepdims=True) * inv_n                  # (1,1)
        ex2 = jnp.sum(am * acc, keepdims=True) * inv_n
        var = ex2 - mean * mean
        y = (acc - mean) * lax.rsqrt(var + eps) * g_ref[...] + bt_ref[...]
    else:
        y = acc
    # TODO(synk): norm='bn' (cross-batch stats) and norm='gn' not implemented.

    if activation == "relu":
        y = jnp.maximum(y, 0.0)
    elif activation == "lrelu":
        y = jnp.where(y > 0, y, 0.01 * y)
    elif activation == "tanh":
        y = jnp.tanh(y)
    elif activation == "sigmoid":
        y = jax.nn.sigmoid(y)
    # TODO(synk): activation='prelu' (learned slope parameter) not implemented.

    o_ref[0] = y.astype(o_ref.dtype)


# ----------------------------------------------------------------------------
# Wrapper: pad + flatten (pure layout, no duplication) -> fused Pallas kernel
# ----------------------------------------------------------------------------

def conv_block_forward(x, params, *, k, s=1, p=0, norm="in", activation="relu",
                       pad_type="mirror", use_bias=True, eps=1e-5,
                       compute_dtype=jnp.bfloat16):
    if s != 1:
        # TODO(synk): stride > 1 (and dilation) not supported by the fused
        # flat-shift path; would need a decimating / strided-window variant.
        raise NotImplementedError("stride > 1 not implemented in Pallas path")

    B, C_in, H, W = x.shape
    w = params["w"]                      # (C_out, C_in, k, k) — PyTorch OIHW
    b = params["b"]                      # (C_out,)
    gamma = params["gamma"]              # (C_out,)
    beta = params["beta"]                # (C_out,)
    C_out = w.shape[0]

    # 1) ReflectionPad2d / ZeroPad2d (pure layout).
    mode = "reflect" if pad_type == "mirror" else "constant"
    xp = jnp.pad(x, ((0, 0), (0, 0), (p, p), (p, p)), mode=mode)
    Hp, Wp = H + 2 * p, W + 2 * p
    Ho, Wo = Hp - k + 1, Wp - k + 1

    # 2) Flatten to (B, C_in, Hp*Wp) once (no im2col duplication), pad the
    #    lane dim to a multiple of 128 and leave room for the max flat shift.
    L = _round_up(Ho * Wp, 128)                   # output lanes (128-multiple)
    off_max = (k - 1) * Wp + (k - 1)
    Lin = _round_up(off_max + L, 128)             # input lanes  (128-multiple)
    xflat = xp.reshape(B, C_in, Hp * Wp).astype(compute_dtype)
    xflat = jnp.pad(xflat, ((0, 0), (0, 0), (0, Lin - Hp * Wp)))

    # Per-tap weight matrices (k*k, C_out, C_in), bf16 for the MXU.
    w3 = jnp.transpose(w, (2, 3, 0, 1)).reshape(k * k, C_out, C_in)
    w3 = w3.astype(compute_dtype)

    # Valid-lane mask: output lane l maps to (ho = l // Wp, wo = l % Wp);
    # lanes with wo >= Wo or l >= Ho*Wp are garbage / padding.
    idx = jnp.arange(L, dtype=jnp.int32)
    valid = ((idx % Wp) < Wo) & (idx < Ho * Wp)
    mask = valid.astype(jnp.float32).reshape(1, L)

    kernel = functools.partial(
        _conv_norm_act_kernel, k=k, Wp=Wp, n_valid=float(Ho * Wo),
        norm=norm, activation=activation, use_bias=use_bias, eps=eps)

    out_flat = pl.pallas_call(
        kernel,
        out_shape=jax.ShapeDtypeStruct((B, C_out, L), x.dtype),
        grid=(B,),
        in_specs=[
            pl.BlockSpec((1, C_in, Lin), lambda i: (i, 0, 0)),        # input
            pl.BlockSpec((k * k, C_out, C_in), lambda i: (0, 0, 0)),  # weights
            pl.BlockSpec((C_out, 1), lambda i: (0, 0)),               # bias
            pl.BlockSpec((C_out, 1), lambda i: (0, 0)),               # gamma
            pl.BlockSpec((C_out, 1), lambda i: (0, 0)),               # beta
            pl.BlockSpec((1, L), lambda i: (0, 0)),                   # mask
        ],
        out_specs=pl.BlockSpec((1, C_out, L), lambda i: (i, 0, 0)),
        compiler_params=pltpu.CompilerParams(
            dimension_semantics=("parallel",),         # megacore over batch
            vmem_limit_bytes=48 * 1024 * 1024),        # fits v7x 64MiB budget
    )(xflat, w3,
      b.reshape(C_out, 1).astype(jnp.float32),
      gamma.reshape(C_out, 1).astype(jnp.float32),
      beta.reshape(C_out, 1).astype(jnp.float32),
      mask)

    # Drop padded / garbage lanes (pure layout).
    y = out_flat[:, :, :Ho * Wp].reshape(B, C_out, Ho, Wp)[:, :, :, :Wo]
    return y


# ----------------------------------------------------------------------------
# Pure-JAX reference (mirrors the PyTorch ConvBlock forward; same bf16 MXU
# operand rounding as the kernel so the comparison is tight)
# ----------------------------------------------------------------------------

def ref_forward(x, params, *, k, s=1, p=0, norm="in", activation="relu",
                pad_type="mirror", use_bias=True, eps=1e-5,
                compute_dtype=jnp.bfloat16):
    w, b = params["w"], params["b"]
    gamma, beta = params["gamma"], params["beta"]
    mode = "reflect" if pad_type == "mirror" else "constant"
    xp = jnp.pad(x, ((0, 0), (0, 0), (p, p), (p, p)), mode=mode)
    y = lax.conv_general_dilated(
        xp.astype(compute_dtype), w.astype(compute_dtype),
        window_strides=(s, s), padding="VALID",
        dimension_numbers=("NCHW", "OIHW", "NCHW"),
        preferred_element_type=jnp.float32)
    if use_bias:
        y = y + b[None, :, None, None]
    if norm == "in":
        mean = y.mean(axis=(2, 3), keepdims=True)
        var = ((y - mean) ** 2).mean(axis=(2, 3), keepdims=True)
        y = (y - mean) * lax.rsqrt(var + eps)
        y = gamma[None, :, None, None] * y + beta[None, :, None, None]
    elif norm == "ln":
        mean = y.mean(axis=(1, 2, 3), keepdims=True)
        var = ((y - mean) ** 2).mean(axis=(1, 2, 3), keepdims=True)
        y = (y - mean) * lax.rsqrt(var + eps)
        y = gamma[None, :, None, None] * y + beta[None, :, None, None]
    if activation == "relu":
        y = jnp.maximum(y, 0.0)
    elif activation == "lrelu":
        y = jnp.where(y > 0, y, 0.01 * y)
    elif activation == "tanh":
        y = jnp.tanh(y)
    elif activation == "sigmoid":
        y = jax.nn.sigmoid(y)
    return y.astype(x.dtype)


# ----------------------------------------------------------------------------
# Parameter init (PyTorch-like uniform fan-in init)
# ----------------------------------------------------------------------------

def init_params(key, c_in, c_out, k):
    k1, k2 = jax.random.split(key)
    fan_in = c_in * k * k
    bound = 1.0 / math.sqrt(fan_in)
    w = jax.random.uniform(k1, (c_out, c_in, k, k), jnp.float32, -bound, bound)
    b = jax.random.uniform(k2, (c_out,), jnp.float32, -bound, bound)
    gamma = jnp.ones((c_out,), jnp.float32)   # InstanceNorm2d affine weight
    beta = jnp.zeros((c_out,), jnp.float32)   # InstanceNorm2d affine bias
    return {"w": w, "b": b, "gamma": gamma, "beta": beta}


# ----------------------------------------------------------------------------

if __name__ == "__main__":
    B, C_in, H, W = 2, 4, 16, 16
    C_out, k, s, p = 8, 3, 1, 1

    key = jax.random.PRNGKey(0)
    k_par, k_x = jax.random.split(key)

    params = init_params(k_par, C_in, C_out, k)
    x = jax.random.normal(k_x, (B, C_in, H, W), jnp.float32)

    out = conv_block_forward(x, params, k=k, s=s, p=p,
                             norm="in", activation="relu", pad_type="mirror")
    out = jax.block_until_ready(out)

    out_ref = ref_forward(x, params, k=k, s=s, p=p,
                          norm="in", activation="relu", pad_type="mirror")
    assert out.shape == (B, C_out, H, W)
    assert jnp.allclose(out, out_ref, rtol=1e-3, atol=2e-3), \
        float(jnp.max(jnp.abs(out - out_ref)))

    print("KERNEL_OK")
</pallas_src>

<mosaic_0001>
module attributes {stable_mosaic.version = 11 : i64} {
  func.func @_conv_norm_act_kernel(%arg0: i32, %arg1: memref<1x4x512xbf16, #tpu.memory_space<vmem>>, %arg2: memref<9x8x4xbf16, #tpu.memory_space<vmem>>, %arg3: memref<8x1xf32, #tpu.memory_space<vmem>>, %arg4: memref<8x1xf32, #tpu.memory_space<vmem>>, %arg5: memref<8x1xf32, #tpu.memory_space<vmem>>, %arg6: memref<1x384xf32, #tpu.memory_space<vmem>>, %arg7: memref<1x8x384xf32, #tpu.memory_space<vmem>>) attributes {dimension_semantics = [#tpu.dimension_semantics<parallel>], iteration_bounds = array<i64: 2>, scalar_prefetch = 0 : i64, scratch_operands = 0 : i64, tpu.core_type = #tpu.core_type<tc>, window_params = [{transform_indices = @transform_0, window_bounds = array<i64: 1, 4, 512>}, {pipeline_mode = #tpu.pipeline_mode<synchronous>, transform_indices = @transform_1, window_bounds = array<i64: 9, 8, 4>}, {pipeline_mode = #tpu.pipeline_mode<synchronous>, transform_indices = @transform_2, window_bounds = array<i64: 8, 1>}, {pipeline_mode = #tpu.pipeline_mode<synchronous>, transform_indices = @transform_3, window_bounds = array<i64: 8, 1>}, {pipeline_mode = #tpu.pipeline_mode<synchronous>, transform_indices = @transform_4, window_bounds = array<i64: 8, 1>}, {pipeline_mode = #tpu.pipeline_mode<synchronous>, transform_indices = @transform_5, window_bounds = array<i64: 1, 384>}, {transform_indices = @transform_6, window_bounds = array<i64: 1, 8, 384>}]} {
    %c0 = arith.constant 0 : index
    %c0_0 = arith.constant 0 : index
    %c0_1 = arith.constant 0 : index
    %0 = vector.load %arg1[%c0, %c0_0, %c0_1] : memref<1x4x512xbf16, #tpu.memory_space<vmem>>, vector<1x4x512xbf16>
    %1 = vector.shape_cast %0 : vector<1x4x512xbf16> to vector<4x512xbf16>
    %c0_2 = arith.constant 0 : index
    %c0_3 = arith.constant 0 : index
    %2 = vector.load %arg6[%c0_2, %c0_3] : memref<1x384xf32, #tpu.memory_space<vmem>>, vector<1x384xf32>
    %cst = arith.constant 0.000000e+00 : f32
    %3 = vector.broadcast %cst : f32 to vector<8x384xf32>
    %c0_4 = arith.constant 0 : index
    %c0_5 = arith.constant 0 : index
    %c0_6 = arith.constant 0 : index
    %4 = vector.load %arg2[%c0_4, %c0_5, %c0_6] : memref<9x8x4xbf16, #tpu.memory_space<vmem>>, vector<1x8x4xbf16>
    %5 = vector.shape_cast %4 : vector<1x8x4xbf16> to vector<8x4xbf16>
    %6 = vector.extract_strided_slice %1 {offsets = [0, 0], sizes = [4, 384], strides = [1, 1]} : vector<4x512xbf16> to vector<4x384xbf16>
    %cst_7 = arith.constant dense<0.000000e+00> : vector<8x384xf32>
    %7 = tpu.matmul %5, %6, %cst_7 {dimension_numbers = #tpu.dot_dimension_numbers<[1], [0], [0], [1], [0, 0, 1, 1], [], []>} : vector<8x4xbf16>, vector<4x384xbf16>, vector<8x384xf32> -> vector<8x384xf32>
    %8 = arith.addf %3, %7 : vector<8x384xf32>
    %c1 = arith.constant 1 : index
    %c0_8 = arith.constant 0 : index
    %c0_9 = arith.constant 0 : index
    %9 = vector.load %arg2[%c1, %c0_8, %c0_9] : memref<9x8x4xbf16, #tpu.memory_space<vmem>>, vector<1x8x4xbf16>
    %10 = vector.shape_cast %9 : vector<1x8x4xbf16> to vector<8x4xbf16>
    %11 = vector.extract_strided_slice %1 {offsets = [0, 1], sizes = [4, 384], strides = [1, 1]} : vector<4x512xbf16> to vector<4x384xbf16>
    %cst_10 = arith.constant dense<0.000000e+00> : vector<8x384xf32>
    %12 = tpu.matmul %10, %11, %cst_10 {dimension_numbers = #tpu.dot_dimension_numbers<[1], [0], [0], [1], [0, 0, 1, 1], [], []>} : vector<8x4xbf16>, vector<4x384xbf16>, vector<8x384xf32> -> vector<8x384xf32>
    %13 = arith.addf %8, %12 : vector<8x384xf32>
    %c2 = arith.constant 2 : index
    %c0_11 = arith.constant 0 : index
    %c0_12 = arith.constant 0 : index
    %14 = vector.load %arg2[%c2, %c0_11, %c0_12] : memref<9x8x4xbf16, #tpu.memory_space<vmem>>, vector<1x8x4xbf16>
    %15 = vector.shape_cast %14 : vector<1x8x4xbf16> to vector<8x4xbf16>
    %16 = vector.extract_strided_slice %1 {offsets = [0, 2], sizes = [4, 384], strides = [1, 1]} : vector<4x512xbf16> to vector<4x384xbf16>
    %cst_13 = arith.constant dense<0.000000e+00> : vector<8x384xf32>
    %17 = tpu.matmul %15, %16, %cst_13 {dimension_numbers = #tpu.dot_dimension_numbers<[1], [0], [0], [1], [0, 0, 1, 1], [], []>} : vector<8x4xbf16>, vector<4x384xbf16>, vector<8x384xf32> -> vector<8x384xf32>
    %18 = arith.addf %13, %17 : vector<8x384xf32>
    %c3 = arith.constant 3 : index
    %c0_14 = arith.constant 0 : index
    %c0_15 = arith.constant 0 : index
    %19 = vector.load %arg2[%c3, %c0_14, %c0_15] : memref<9x8x4xbf16, #tpu.memory_space<vmem>>, vector<1x8x4xbf16>
    %20 = vector.shape_cast %19 : vector<1x8x4xbf16> to vector<8x4xbf16>
    %21 = vector.extract_strided_slice %1 {offsets = [0, 18], sizes = [4, 384], strides = [1, 1]} : vector<4x512xbf16> to vector<4x384xbf16>
    %cst_16 = arith.constant dense<0.000000e+00> : vector<8x384xf32>
    %22 = tpu.matmul %20, %21, %cst_16 {dimension_numbers = #tpu.dot_dimension_numbers<[1], [0], [0], [1], [0, 0, 1, 1], [], []>} : vector<8x4xbf16>, vector<4x384xbf16>, vector<8x384xf32> -> vector<8x384xf32>
    %23 = arith.addf %18, %22 : vector<8x384xf32>
    %c4 = arith.constant 4 : index
    %c0_17 = arith.constant 0 : index
    %c0_18 = arith.constant 0 : index
    %24 = vector.load %arg2[%c4, %c0_17, %c0_18] : memref<9x8x4xbf16, #tpu.memory_space<vmem>>, vector<1x8x4xbf16>
    %25 = vector.shape_cast %24 : vector<1x8x4xbf16> to vector<8x4xbf16>
    %26 = vector.extract_strided_slice %1 {offsets = [0, 19], sizes = [4, 384], strides = [1, 1]} : vector<4x512xbf16> to vector<4x384xbf16>
    %cst_19 = arith.constant dense<0.000000e+00> : vector<8x384xf32>
    %27 = tpu.matmul %25, %26, %cst_19 {dimension_numbers = #tpu.dot_dimension_numbers<[1], [0], [0], [1], [0, 0, 1, 1], [], []>} : vector<8x4xbf16>, vector<4x384xbf16>, vector<8x384xf32> -> vector<8x384xf32>
    %28 = arith.addf %23, %27 : vector<8x384xf32>
    %c5 = arith.constant 5 : index
    %c0_20 = arith.constant 0 : index
    %c0_21 = arith.constant 0 : index
    %29 = vector.load %arg2[%c5, %c0_20, %c0_21] : memref<9x8x4xbf16, #tpu.memory_space<vmem>>, vector<1x8x4xbf16>
    %30 = vector.shape_cast %29 : vector<1x8x4xbf16> to vector<8x4xbf16>
    %31 = vector.extract_strided_slice %1 {offsets = [0, 20], sizes = [4, 384], strides = [1, 1]} : vector<4x512xbf16> to vector<4x384xbf16>
    %cst_22 = arith.constant dense<0.000000e+00> : vector<8x384xf32>
    %32 = tpu.matmul %30, %31, %cst_22 {dimension_numbers = #tpu.dot_dimension_numbers<[1], [0], [0], [1], [0, 0, 1, 1], [], []>} : vector<8x4xbf16>, vector<4x384xbf16>, vector<8x384xf32> -> vector<8x384xf32>
    %33 = arith.addf %28, %32 : vector<8x384xf32>
    %c6 = arith.constant 6 : index
    %c0_23 = arith.constant 0 : index
    %c0_24 = arith.constant 0 : index
    %34 = vector.load %arg2[%c6, %c0_23, %c0_24] : memref<9x8x4xbf16, #tpu.memory_space<vmem>>, vector<1x8x4xbf16>
    %35 = vector.shape_cast %34 : vector<1x8x4xbf16> to vector<8x4xbf16>
    %36 = vector.extract_strided_slice %1 {offsets = [0, 36], sizes = [4, 384], strides = [1, 1]} : vector<4x512xbf16> to vector<4x384xbf16>
    %cst_25 = arith.constant dense<0.000000e+00> : vector<8x384xf32>
    %37 = tpu.matmul %35, %36, %cst_25 {dimension_numbers = #tpu.dot_dimension_numbers<[1], [0], [0], [1], [0, 0, 1, 1], [], []>} : vector<8x4xbf16>, vector<4x384xbf16>, vector<8x384xf32> -> vector<8x384xf32>
    %38 = arith.addf %33, %37 : vector<8x384xf32>
    %c7 = arith.constant 7 : index
    %c0_26 = arith.constant 0 : index
    %c0_27 = arith.constant 0 : index
    %39 = vector.load %arg2[%c7, %c0_26, %c0_27] : memref<9x8x4xbf16, #tpu.memory_space<vmem>>, vector<1x8x4xbf16>
    %40 = vector.shape_cast %39 : vector<1x8x4xbf16> to vector<8x4xbf16>
    %41 = vector.extract_strided_slice %1 {offsets = [0, 37], sizes = [4, 384], strides = [1, 1]} : vector<4x512xbf16> to vector<4x384xbf16>
    %cst_28 = arith.constant dense<0.000000e+00> : vector<8x384xf32>
    %42 = tpu.matmul %40, %41, %cst_28 {dimension_numbers = #tpu.dot_dimension_numbers<[1], [0], [0], [1], [0, 0, 1, 1], [], []>} : vector<8x4xbf16>, vector<4x384xbf16>, vector<8x384xf32> -> vector<8x384xf32>
    %43 = arith.addf %38, %42 : vector<8x384xf32>
    %c8 = arith.constant 8 : index
    %c0_29 = arith.constant 0 : index
    %c0_30 = arith.constant 0 : index
    %44 = vector.load %arg2[%c8, %c0_29, %c0_30] : memref<9x8x4xbf16, #tpu.memory_space<vmem>>, vector<1x8x4xbf16>
    %45 = vector.shape_cast %44 : vector<1x8x4xbf16> to vector<8x4xbf16>
    %46 = vector.extract_strided_slice %1 {offsets = [0, 38], sizes = [4, 384], strides = [1, 1]} : vector<4x512xbf16> to vector<4x384xbf16>
    %cst_31 = arith.constant dense<0.000000e+00> : vector<8x384xf32>
    %47 = tpu.matmul %45, %46, %cst_31 {dimension_numbers = #tpu.dot_dimension_numbers<[1], [0], [0], [1], [0, 0, 1, 1], [], []>} : vector<8x4xbf16>, vector<4x384xbf16>, vector<8x384xf32> -> vector<8x384xf32>
    %48 = arith.addf %43, %47 : vector<8x384xf32>
    %49 = vector.broadcast %2 : vector<1x384xf32> to vector<8x384xf32>
    %50 = arith.mulf %48, %49 : vector<8x384xf32>
    %cst_32 = arith.constant dense<0.000000e+00> : vector<8xf32>
    %51 = vector.multi_reduction <add>, %50, %cst_32 [1] : vector<8x384xf32> to vector<8xf32>
    %52 = vector.shape_cast %51 : vector<8xf32> to vector<8x1xf32>
    %cst_33 = arith.constant 3.906250e-03 : f32
    %53 = vector.broadcast %cst_33 : f32 to vector<8x1xf32>
    %54 = arith.mulf %52, %53 : vector<8x1xf32>
    %55 = arith.mulf %50, %48 : vector<8x384xf32>
    %cst_34 = arith.constant dense<0.000000e+00> : vector<8xf32>
    %56 = vector.multi_reduction <add>, %55, %cst_34 [1] : vector<8x384xf32> to vector<8xf32>
    %57 = vector.shape_cast %56 : vector<8xf32> to vector<8x1xf32>
    %cst_35 = arith.constant 3.906250e-03 : f32
    %58 = vector.broadcast %cst_35 : f32 to vector<8x1xf32>
    %59 = arith.mulf %57, %58 : vector<8x1xf32>
    %60 = arith.mulf %54, %54 : vector<8x1xf32>
    %61 = arith.subf %59, %60 : vector<8x1xf32>
    %c0_36 = arith.constant 0 : index
    %c0_37 = arith.constant 0 : index
    %62 = vector.load %arg4[%c0_36, %c0_37] : memref<8x1xf32, #tpu.memory_space<vmem>>, vector<8x1xf32>
    %cst_38 = arith.constant 9.99999974E-6 : f32
    %63 = vector.broadcast %cst_38 : f32 to vector<8x1xf32>
    %64 = arith.addf %61, %63 : vector<8x1xf32>
    %65 = math.rsqrt %64 : vector<8x1xf32>
    %66 = arith.mulf %62, %65 : vector<8x1xf32>
    %c0_39 = arith.constant 0 : index
    %c0_40 = arith.constant 0 : index
    %67 = vector.load %arg5[%c0_39, %c0_40] : memref<8x1xf32, #tpu.memory_space<vmem>>, vector<8x1xf32>
    %68 = arith.mulf %54, %66 : vector<8x1xf32>
    %69 = arith.subf %67, %68 : vector<8x1xf32>
    %70 = vector.broadcast %66 : vector<8x1xf32> to vector<8x384xf32>
    %71 = arith.mulf %48, %70 : vector<8x384xf32>
    %72 = vector.broadcast %69 : vector<8x1xf32> to vector<8x384xf32>
    %73 = arith.addf %71, %72 : vector<8x384xf32>
    %cst_41 = arith.constant 0.000000e+00 : f32
    %74 = vector.broadcast %cst_41 : f32 to vector<8x384xf32>
    %75 = arith.maximumf %73, %74 : vector<8x384xf32>
    %c0_42 = arith.constant 0 : index
    %c0_43 = arith.constant 0 : index
    %c0_44 = arith.constant 0 : index
    %76 = vector.load %arg7[%c0_42, %c0_43, %c0_44] : memref<1x8x384xf32, #tpu.memory_space<vmem>>, vector<1x8x384xf32>
    %77 = vector.shape_cast %76 : vector<1x8x384xf32> to vector<8x384xf32>
    %78 = vector.shape_cast %75 : vector<8x384xf32> to vector<1x8x384xf32>
    tpu.vector_store %arg7[%c0_42, %c0_43, %c0_44], %78 {strides = array<i32>} : memref<1x8x384xf32, #tpu.memory_space<vmem>>, vector<1x8x384xf32>,
    return
  }
  func.func @transform_0(%arg0: i32) -> (i32, i32, i32) {
    %c0_i32 = arith.constant 0 : i32
    %c0_i32_0 = arith.constant 0 : i32
    %c0_i32_1 = arith.constant 0 : i32
    return %arg0, %c0_i32, %c0_i32_0 : i32, i32, i32
  }
  func.func @transform_1(%arg0: i32) -> (i32, i32, i32) {
    %c0_i32 = arith.constant 0 : i32
    %c0_i32_0 = arith.constant 0 : i32
    %c0_i32_1 = arith.constant 0 : i32
    %c0_i32_2 = arith.constant 0 : i32
    return %c0_i32, %c0_i32_0, %c0_i32_1 : i32, i32, i32
  }
  func.func @transform_2(%arg0: i32) -> (i32, i32) {
    %c0_i32 = arith.constant 0 : i32
    %c0_i32_0 = arith.constant 0 : i32
    %c0_i32_1 = arith.constant 0 : i32
    return %c0_i32, %c0_i32_0 : i32, i32
  }
  func.func @transform_3(%arg0: i32) -> (i32, i32) {
    %c0_i32 = arith.constant 0 : i32
    %c0_i32_0 = arith.constant 0 : i32
    %c0_i32_1 = arith.constant 0 : i32
    return %c0_i32, %c0_i32_0 : i32, i32
  }
  func.func @transform_4(%arg0: i32) -> (i32, i32) {
    %c0_i32 = arith.constant 0 : i32
    %c0_i32_0 = arith.constant 0 : i32
    %c0_i32_1 = arith.constant 0 : i32
    return %c0_i32, %c0_i32_0 : i32, i32
  }
  func.func @transform_5(%arg0: i32) -> (i32, i32) {
    %c0_i32 = arith.constant 0 : i32
    %c0_i32_0 = arith.constant 0 : i32
    %c0_i32_1 = arith.constant 0 : i32
    return %c0_i32, %c0_i32_0 : i32, i32
  }
  func.func @transform_6(%arg0: i32) -> (i32, i32, i32) {
    %c0_i32 = arith.constant 0 : i32
    %c0_i32_0 = arith.constant 0 : i32
    %c0_i32_1 = arith.constant 0 : i32
    return %arg0, %c0_i32, %c0_i32_0 : i32, i32, i32
  }
}

</mosaic_0001>

<bundles_post_ra>
// kernel: tpu_custom_call.1
= control target key start
LH: loop header
LB: loop body
LE: loop exit
PB: predicated region body
PF: predicated region fallthrough
CT: control target
= control target key end

     0   :  { %11 = vsyncpa [#allocation3], 0  ;;  %s1478_s0 = inlined_call_operand.vmem [shape: bf16[2,4,512], index: 0, kind: input, shape index: {}]   ;;  %s1479_s1 = inlined_call_operand.vmem [shape: bf16[9,8,4], index: 1, kind: input, shape index: {}]   ;;  %s1480_s2 = inlined_call_operand.vmem [shape: f32[8,1], index: 2, kind: input, shape index: {}]   ;;  %s1481_s3 = inlined_call_operand.vmem [shape: f32[8,1], index: 3, kind: input, shape index: {}]   ;;  %s1482_s4 = inlined_call_operand.vmem [shape: f32[8,1], index: 4, kind: input, shape index: {}]   ;;  %s1483_s5 = inlined_call_operand.vmem [shape: f32[1,384], index: 5, kind: input, shape index: {}]   ;;  %s1484_s6 = inlined_call_operand.hbm [shape: f32[2,8,384], index: 6, kind: output, shape index: {}]  }
   0x1   :  { %13 = vsyncpa [#allocation3 + $0x1], 0  ;;  %s1268_s21 = smov 0   ;;  %s1270_s22 = smov 0  }
   0x2   :  { %s1272_s23 = smov 0   ;;  %s1274_s2 = smov 0  }
   0x3 LB: > { %s1289_s24 = sadd.s32 4294967295, %s1222_s2   ;;  %s1061_s25 = sadd.s32 4294967294, %s1222_s2   ;;  %s1222_s2 = sphi %s1274_s2, %s1490_s2   ;;  %s1218_s23 = sphi %s1272_s23, %s1489_s23   ;;  %s1214_s22 = sphi %s1270_s22, %s1488_s22   ;;  %s1210_s21 = sphi %s1268_s21, %s1487_s21  }
   0x4   : > { %s1293_s26 = sadd.s32 1, %s1222_s2   ;;  %s157_s27 = sadd.s32 1, %s1218_s23 }
   0x5   : > { %s154_s28 = ssub.s32 %s1222_s2, %s1293_s26  ;;  %p167_p0 = scmp.ne.s32.totalorder %s1218_s23, %s1214_s22 }
   0x6   : > { %p155_p1 = scmp.eq.s32.totalorder %s154_s28, 0  ;;  %p168_p2 = scmp.eq.s32.totalorder %s1289_s24, 1 }
   0x7   : > { %p173_p3 = scmp.ne.s32.totalorder %s1214_s22, %s1210_s21  ;;  %p174_p4 = scmp.eq.s32.totalorder %s1061_s25, 1 }
   0x8   : > { %s1304_s29 = scalar_select %p155_p1, %s1218_s23, %s157_s27  }
   0x9   : > { %p1306_p5 = por %p168_p2, %p167_p0  ;;  %p1310_p6 = por %p174_p4, %p173_p3 }
   0xa   : > { %p1064_p7 = scmp.ge.s32.totalorder %s1222_s2, 1  ;;  %p215_p8 = scmp.lt.s32.totalorder %s1222_s2, 3 }
   0xc   : > { %p216_p9 = pnand %p1064_p7, %p215_p8 }
   0xd   : > { %p245_p10 = scmp.lt.s32.totalorder (!%p216_p9), %s1289_s24, 1  ;;  %s1224_s13 = smov (!%p216_p9), 127  }
   0xe   : > { %219 = sbr.rel (%p216_p9) target bundleno = 673 (0x2a1), region = 44  ;;  %s1225_s14 = smov (!%p216_p9), 126  }
   0xf   : > { %s1226_s15 = smov (!%p216_p9), 110   ;;  %s1227_s16 = smov (!%p216_p9), 109  }
  0x10   : > { %s1228_s17 = smov (!%p216_p9), 108   ;;  %s1229_s18 = smov (!%p216_p9), 92  }
  0x11   : > { %s1230_s19 = smov (!%p216_p9), 91   ;;  %s1231_s20 = smov (!%p216_p9), 90  }
  0x12   : > { %s1180_s10 = scalar_lea.hbm (!%p216_p9), %s1484_s6, 48 }
  0x13   : > { %s246_s8 = scalar_select %p245_p10, %s1289_s24, 1  ;;  %vm282_vm0 = vcmask 1041408   ;;  %v253_v37 = vld [vmem:[%s1479_s1] sm:$0xf]  ;;  %vm278_vm1 = vcmask 31744   ;;  %vm402_vm2 = vcmask 1031168  }
  0x14   : > { %vm274_vm3 = vcmask 1039360   ;;  %v1067_v54 = vld [vmem:[%s1479_s1 + $0x4] sm:$0xf]  ;;  %vm479_vm4 = vcmask 900096   ;;  %v1074_v61 = vld [vmem:[%s1479_s1 + $0x8] sm:$0xf] }
  0x15   : > { %s1105_s9 = sshll.u32 %s246_s8, 3  ;;  %vm556_vm5 = vcmask 891904   ;;  %vm633_vm6 = vcmask 883712   ;;  %vm710_vm7 = vcmask 752640   ;;  %vm787_vm8 = vcmask 744448  }
  0x16   : > { %s249_s12 = scalar_lea.vmem %s1478_s0, %s1105_s9  ;;  %vm864_vm9 = vcmask 736256  }
  0x17   : > { %v1321_v0 = vld [vmem:[%s249_s12] sm:$0xff] }
  0x18   : > { %257 = vst [vmem:[#allocation1] ss:$4 sm:$0xff] %v1321_v0 }
  0x1f   : > { %v262_v1 = vld.sshfl [vmem:[#allocation1 + $0x10] sm:$0xff pattern:$0x73625140]  ;;  %v258_v2 = vld.sshfl [vmem:[#allocation1] sm:$0xff pattern:$0x73625140] }
  0x20   : > { %270 = vrot.lane.b32.xlu0 %v262_v1, %s1224_s13  ;;  %266 = vrot.lane.b32.xlu1 %v258_v2, %s1224_s13  ;;  %v264_v3 = vld.sshfl [vmem:[#allocation1 + $0x18] sm:$0xff pattern:$0x73625140]  ;;  %v260_v4 = vld.sshfl [vmem:[#allocation1 + $0x8] sm:$0xff pattern:$0x73625140] }
  0x21   : > { %331 = vst [vmem:[#allocation1] ss:$4 sm:$0xff] %v1321_v0 }
  0x28   : > { %272 = vrot.lane.b32.xlu0 %v264_v3, %s1224_s13  ;;  %268 = vrot.lane.b32.xlu1 %v260_v4, %s1224_s13  ;;  %v1325_v5 = vld.sshfl [vmem:[#allocation1] sm:$0xff pattern:$0x73625140]  ;;  %v1327_v6 = vld.sshfl [vmem:[#allocation1 + $0x8] sm:$0xff pattern:$0x73625140] }
  0x29   : > { %v1329_v7 = vld.sshfl [vmem:[#allocation1 + $0x10] sm:$0xff pattern:$0x73625140]  ;;  %v338_v34 = vsel %vm282_vm0, %v1325_v5, 0  ;;  %v340_v45 = vsel %vm282_vm0, %v1327_v6, 0  ;;  %s242_s13 = sand.u32 1, %s1214_s22  }
  0x2a   : > { %385 = vst [vmem:[#allocation1] ss:$4 sm:$0xff] %v1321_v0  ;;  %351 = vmatpush.bf16.msra.mxu3 %v338_v34  ;;  %v342_v49 = vsel %vm282_vm0, %v1329_v7, 0 }
  0x2d   : > { %1071 = vmatmul.msk.bf16.vlgmr.msra.gmra.mxu3 %vm278_vm1, %v253_v37 }
  0x31   : > { %v388_v8 = vld.sshfl [vmem:[#allocation1 + $0x8] sm:$0xff pattern:$0x73625140]  ;;  %v390_v9 = vld.sshfl [vmem:[#allocation1 + $0x10] sm:$0xff pattern:$0x73625140] }
  0x32   : > { %398 = vrot.lane.b32.xlu0 %v390_v9, %s1225_s14  ;;  %v386_v10 = vld.sshfl [vmem:[#allocation1] sm:$0xff pattern:$0x73625140]  ;;  %v392_v11 = vld.sshfl [vmem:[#allocation1 + $0x18] sm:$0xff pattern:$0x73625140] }
  0x33   : > { %394 = vrot.lane.b32.xlu2 %v386_v10, %s1225_s14  ;;  %462 = vst [vmem:[#allocation1] ss:$4 sm:$0xff] %v1321_v0 }
  0x3a   : > { %400 = vrot.lane.b32.xlu0 %v392_v11, %s1225_s14  ;;  %v465_v12 = vld.sshfl [vmem:[#allocation1 + $0x8] sm:$0xff pattern:$0x73625140]  ;;  %v467_v13 = vld.sshfl [vmem:[#allocation1 + $0x10] sm:$0xff pattern:$0x73625140] }
  0x3b   : > { %v469_v14 = vld.sshfl [vmem:[#allocation1 + $0x18] sm:$0xff pattern:$0x73625140]  ;;  %473 = vrot.lane.b32.xlu1 %v465_v12, %s1226_s15  ;;  %396 = vrot.lane.b32.xlu2 %v388_v8, %s1225_s14  ;;  %v463_v15 = vld.sshfl [vmem:[#allocation1] sm:$0xff pattern:$0x73625140] }
  0x3c   : > { %539 = vst [vmem:[#allocation1] ss:$4 sm:$0xff] %v1321_v0  ;;  %v1078_v11 = vld [vmem:[%s1479_s1 + $0xc] sm:$0xf]  ;;  %s1106_s14 = smul.u32 24, %s242_s13 }
  0x43   : > { %471 = vrot.lane.b32.xlu1 %v463_v15, %s1226_s15  ;;  %v544_v16 = vld.sshfl [vmem:[#allocation1 + $0x10] sm:$0xff pattern:$0x73625140]  ;;  %v540_v17 = vld.sshfl [vmem:[#allocation1] sm:$0xff pattern:$0x73625140]  ;;  %475 = vrot.lane.b32.xlu2 %v467_v13, %s1226_s15 }
  0x44   : > { %552 = vrot.lane.b32.xlu0 %v544_v16, %s1227_s16  ;;  %v546_v18 = vld.sshfl [vmem:[#allocation1 + $0x18] sm:$0xff pattern:$0x73625140]  ;;  %v542_v19 = vld.sshfl [vmem:[#allocation1 + $0x8] sm:$0xff pattern:$0x73625140] }
  0x45   : > { %616 = vst [vmem:[#allocation1] ss:$4 sm:$0xff] %v1321_v0 }
  0x4b   : > { %554 = vrot.lane.b32.xlu1 %v546_v18, %s1227_s16  ;;  %477 = vrot.lane.b32.xlu2 %v469_v14, %s1226_s15  ;;  %s1107_s15 = smul.u32 24, %s1289_s24  ;;  %s986_s24 = scalar_lea.sflag [#allocation3], %s242_s13 }
  0x4c   : > { %550 = vrot.lane.b32.xlu0 %v542_v19, %s1227_s16  ;;  %v619_v20 = vld.sshfl [vmem:[#allocation1 + $0x8] sm:$0xff pattern:$0x73625140]  ;;  %v621_v21 = vld.sshfl [vmem:[#allocation1 + $0x10] sm:$0xff pattern:$0x73625140] }
  0x4d   : > { %v623_v22 = vld.sshfl [vmem:[#allocation1 + $0x18] sm:$0xff pattern:$0x73625140]  ;;  %v617_v23 = vld.sshfl [vmem:[#allocation1] sm:$0xff pattern:$0x73625140] }
  0x4e   : > { %693 = vst [vmem:[#allocation1] ss:$4 sm:$0xff] %v1321_v0 }
  0x53   : > { %625 = vrot.lane.b32.xlu1 %v617_v23, %s1228_s17  ;;  %548 = vrot.lane.b32.xlu2 %v540_v17, %s1227_s16 }
  0x55   : > { %v700_v24 = vld.sshfl [vmem:[#allocation1 + $0x18] sm:$0xff pattern:$0x73625140]  ;;  %v694_v25 = vld.sshfl [vmem:[#allocation1] sm:$0xff pattern:$0x73625140] }
  0x56   : > { %702 = vrot.lane.b32.xlu0 %v694_v25, %s1229_s18  ;;  %v696_v26 = vld.sshfl [vmem:[#allocation1 + $0x8] sm:$0xff pattern:$0x73625140]  ;;  %v698_v27 = vld.sshfl [vmem:[#allocation1 + $0x10] sm:$0xff pattern:$0x73625140] }
  0x57   : > { %770 = vst [vmem:[#allocation1] ss:$4 sm:$0xff] %v1321_v0 }
  0x5b   : > { %704 = vrot.lane.b32.xlu1 %v696_v26, %s1229_s18  ;;  %627 = vrot.lane.b32.xlu2 %v619_v20, %s1228_s17 }
  0x5e   : > { %631 = vrot.lane.b32.xlu0 %v623_v22, %s1228_s17  ;;  %v771_v28 = vld.sshfl [vmem:[#allocation1] sm:$0xff pattern:$0x73625140]  ;;  %v773_v29 = vld.sshfl [vmem:[#allocation1 + $0x8] sm:$0xff pattern:$0x73625140] }
  0x5f   : > { %v775_v30 = vld.sshfl [vmem:[#allocation1 + $0x10] sm:$0xff pattern:$0x73625140]  ;;  %v777_v31 = vld.sshfl [vmem:[#allocation1 + $0x18] sm:$0xff pattern:$0x73625140] }
  0x60   : > { %847 = vst [vmem:[#allocation1] ss:$4 sm:$0xff] %v1321_v0 }
  0x63   : > { %706 = vrot.lane.b32.xlu1 %v698_v27, %s1229_s18  ;;  %629 = vrot.lane.b32.xlu2 %v621_v21, %s1228_s17 }
  0x66   : > { %783 = vrot.lane.b32.xlu0 %v775_v30, %s1230_s19  ;;  %v1082_v30 = vld [vmem:[%s1479_s1 + $0x10] sm:$0xf] }
  0x67   : > { %v852_v32 = vld.sshfl [vmem:[#allocation1 + $0x10] sm:$0xff pattern:$0x73625140]  ;;  %v848_v33 = vld.sshfl [vmem:[#allocation1] sm:$0xff pattern:$0x73625140] }
  0x68   : > { %v850_v35 = vld.sshfl [vmem:[#allocation1 + $0x8] sm:$0xff pattern:$0x73625140]  ;;  %v854_v36 = vld.sshfl [vmem:[#allocation1 + $0x18] sm:$0xff pattern:$0x73625140] }
  0x6b   : > { %708 = vrot.lane.b32.xlu1 %v700_v24, %s1229_s18  ;;  %781 = vrot.lane.b32.xlu2 %v773_v29, %s1230_s19  ;;  %s997_s18 = scalar_lea.hbm %s1484_s6, %s1107_s15 }
  0x6c   : > { %s1001_s25 = sshll.u32 %s997_s18, 4  ;;  %s1002_s25 = int_to_ptr.hbm [resolvable:$true] %s1001_s25 }
  0x6d   : > { %s1174_s27 = sshra.s32 %s1002_s25, 4  ;;  %s1175_s27 = int_to_ptr.hbm [resolvable:$true] %s1174_s27 }
  0x6e   : > { %785 = vrot.lane.b32.xlu0 %v777_v31, %s1230_s19  ;;  %s1176_s28 = scalar_lea.hbm %s1175_s27, 24  ;;  %p1181_p0 = scmp.lt.s32.totalorder %s1175_s27, %s1484_s6 }
  0x6f   : > { %p1177_p11 = scmp.ne.s32.totalorder %s1175_s27, %s1176_s28  ;;  %p1182_p1 = scmp.lt.s32.totalorder %s1180_s10, %s1176_s28 }
  0x71   : > { %p1178_p12 = pnand %p1177_p11, %p1306_p5  ;;  %p1183_p2 = por %p1182_p1, %p1181_p0 }
  0x73   : > { %860 = vrot.lane.b32.xlu1 %v852_v32, %s1231_s20  ;;  %779 = vrot.lane.b32.xlu2 %v771_v28, %s1230_s19  ;;  %v1086_v28 = vld [vmem:[%s1479_s1 + $0x14] sm:$0xf]  ;;  %s244_s19 = scalar_lea.vmem [#allocation2], %s1106_s14  ;;  %p1179_p13 = pneg %p1178_p12 }
  0x75   : > { %p1184_p3 = pnand %p1183_p2, %p1179_p13 }
  0x76   : > { %856 = vrot.lane.b32.xlu0 %v848_v33, %s1231_s20 }
  0x7b   : > { %858 = vrot.lane.b32.xlu1 %v850_v35, %s1231_s20  ;;  %862 = vrot.lane.b32.xlu2 %v854_v36, %s1231_s20  ;;  %s999_s20 = sshll.u32 %s244_s19, 4  ;;  %s1000_s20 = int_to_ptr.vmem [resolvable:$true] %s999_s20 }
  0x8d   : > { %v395_v38 = vpop.permute.xlu2 %394 }
  0x92   : > { %v271_v39 = vpop.permute.xlu0 %270  ;;  %v267_v40 = vpop.permute.xlu1 %266 }
  0x95   : > { %v397_v41 = vpop.permute.xlu2 %396 }
  0x96   : > { %v403_v42 = vsel %vm402_vm2, %v395_v38, %v397_v41 }
  0x97   : > { %v410_v53 = vsel %vm282_vm0, %v403_v42, 0 }
  0x9a   : > { %v273_v43 = vpop.permute.xlu0 %272  ;;  %v269_v44 = vpop.permute.xlu1 %268 }
  0x9b   : > { %v275_v46 = vsel %vm274_vm3, %v267_v40, %v269_v44  ;;  %v276_v47 = vsel %vm274_vm3, %v269_v44, %v271_v39  ;;  %v277_v48 = vsel %vm274_vm3, %v271_v39, %v273_v43  ;;  %v1090_v43 = vld [vmem:[%s1479_s1 + $0x18] sm:$0xf] }
  0x9c   : > { %v284_v50 = vsel %vm282_vm0, %v275_v46, 0  ;;  %v287_v51 = vsel %vm282_vm0, %v276_v47, 0  ;;  %v290_v52 = vsel %vm282_vm0, %v277_v48, 0 }
  0x9d   : > { %299 = vmatpush.bf16.msra.mxu0 %v284_v50  ;;  %312 = vmatpush.bf16.msra.mxu1 %v287_v51  ;;  %v476_v55 = vpop.permute.xlu2 %475 }
  0x9e   : > { %325 = vmatpush.bf16.msra.mxu2 %v290_v52 }
  0xa0   : > { %1068 = vmatmul.msk.bf16.vlgmr.msra.gmra.mxu0 %vm278_vm1, %v1067_v54  ;;  %1069 = vmatmul.msk.bf16.vlgmr.msra.gmra.mxu1 %vm278_vm1, %v1067_v54 }
  0xa1   : > { %364 = vmatpush.bf16.msrb.mxu0 %v340_v45  ;;  %377 = vmatpush.bf16.msrb.mxu1 %v342_v49 }
  0xa2   : > { %425 = vmatpush.bf16.msrb.mxu2 %v410_v53 }
  0xa3   : > { %1070 = vmatmul.msk.bf16.vlgmr.msra.gmra.mxu2 %vm278_vm1, %v1067_v54 }
  0xa4   : > { %v399_v56 = vpop.permute.xlu0 %398 }
  0xa5   : > { %v404_v57 = vsel %vm402_vm2, %v397_v41, %v399_v56  ;;  %v478_v58 = vpop.permute.xlu2 %477 }
  0xa6   : > { %v413_v59 = vsel %vm282_vm0, %v404_v57, 0  ;;  %v482_v60 = vsel %vm479_vm4, %v476_v55, %v478_v58 }
  0xa7   : > { %438 = vmatpush.bf16.msrb.mxu3 %v413_v59  ;;  %v493_v62 = vsel %vm282_vm0, %v482_v60, 0 }
  0xaa   : > { %1076 = vmatmul.msk.bf16.vlgmr.msrb.gmra.mxu3 %vm278_vm1, %v1074_v61 }
  0xab   : > { %528 = vmatpush.bf16.msra.mxu3 %v493_v62 }
  0xac   : > { %v401_v63 = vpop.permute.xlu0 %400 }
  0xad   : > { %v405_v0 = vsel %vm402_vm2, %v399_v56, %v401_v63  ;;  %v474_v1 = vpop.permute.xlu1 %473  ;;  %v549_v2 = vpop.permute.xlu2 %548  ;;  %v1094_v56 = vld [vmem:[%s1479_s1 + $0x1c] sm:$0xf]  ;;  %v1098_v63 = vld [vmem:[%s1479_s1 + $0x20] sm:$0xf] }
  0xae   : > { %v416_v3 = vsel %vm282_vm0, %v405_v0, 0  ;;  %v481_v4 = vsel %vm479_vm4, %v474_v1, %v476_v55 }
  0xaf   : > { %v490_v5 = vsel %vm282_vm0, %v481_v4, 0  ;;  %451 = vmatpush.bf16.msra.mxu0 %v416_v3 }
  0xb0   : > { %515 = vmatpush.bf16.msra.mxu2 %v490_v5  ;;  %1072 = vmatmul.msk.bf16.vlgmr.msrb.gmra.mxu0 %vm278_vm1, %v253_v37  ;;  %v353_v0 = vpop.f32.mrf.mxu3 }
  0xb1   : > { %1073 = vmatmul.msk.bf16.vlgmr.msrb.gmra.mxu1 %vm278_vm1, %v253_v37 }
  0xb3   : > { %1075 = vmatmul.msk.bf16.vlgmr.msrb.gmra.mxu2 %vm278_vm1, %v1074_v61 }
  0xb5   : > { %v472_v6 = vpop.permute.xlu1 %471  ;;  %v628_v7 = vpop.permute.xlu2 %627 }
  0xb6   : > { %v480_v8 = vsel %vm479_vm4, %v472_v6, %v474_v1  ;;  %v553_v9 = vpop.permute.xlu0 %552 }
  0xb7   : > { %v487_v10 = vsel %vm282_vm0, %v480_v8, 0 }
  0xb8   : > { %502 = vmatpush.bf16.msra.mxu1 %v487_v10  ;;  %v355_v1 = vpop.f32.mrf.mxu3 }
  0xba   : > { %1081 = vmatmul.msk.bf16.vlgmr.msra.gmra.mxu3 %vm278_vm1, %v1078_v11 }
  0xbd   : > { %v555_v12 = vpop.permute.xlu1 %554  ;;  %v630_v13 = vpop.permute.xlu2 %629 }
  0xbe   : > { %v559_v14 = vsel %vm556_vm5, %v553_v9, %v555_v12  ;;  %v551_v15 = vpop.permute.xlu0 %550  ;;  %v635_v16 = vsel %vm633_vm6, %v628_v7, %v630_v13 }
  0xbf   : > { %v570_v17 = vsel %vm282_vm0, %v559_v14, 0  ;;  %v558_v18 = vsel %vm556_vm5, %v551_v15, %v553_v9  ;;  %v557_v19 = vsel %vm556_vm5, %v549_v2, %v551_v15  ;;  %v644_v22 = vsel %vm282_vm0, %v635_v16, 0 }
  0xc0   : > { %v567_v20 = vsel %vm282_vm0, %v558_v18, 0  ;;  %v564_v21 = vsel %vm282_vm0, %v557_v19, 0  ;;  %605 = vmatpush.bf16.msrb.mxu2 %v570_v17  ;;  %1077 = vmatmul.msk.bf16.vlgmr.msra.gmra.mxu0 %vm278_vm1, %v1074_v61 }
  0xc1   : > { %592 = vmatpush.bf16.msrb.mxu1 %v567_v20  ;;  %579 = vmatpush.bf16.msrb.mxu0 %v564_v21 }
  0xc2   : > { %1079 = vmatmul.msk.bf16.vlgmr.msra.gmra.mxu1 %vm278_vm1, %v1078_v11 }
  0xc3   : > { %1080 = vmatmul.msk.bf16.vlgmr.msra.gmra.mxu2 %vm278_vm1, %v1078_v11 }
  0xc5   : > { %669 = vmatpush.bf16.msra.mxu0 %v644_v22  ;;  %v626_v23 = vpop.permute.xlu1 %625  ;;  %v782_v24 = vpop.permute.xlu2 %781 }
  0xc6   : > { %v634_v25 = vsel %vm633_vm6, %v626_v23, %v628_v7 }
  0xc7   : > { %v641_v26 = vsel %vm282_vm0, %v634_v25, 0 }
  0xc8   : > { %v703_v27 = vpop.permute.xlu0 %702  ;;  %656 = vmatpush.bf16.msrb.mxu3 %v641_v26 }
  0xcb   : > { %1087 = vmatmul.msk.bf16.vlgmr.msrb.gmra.mxu3 %vm278_vm1, %v1086_v28 }
  0xcd   : > { %v705_v29 = vpop.permute.xlu1 %704  ;;  %v780_v31 = vpop.permute.xlu2 %779 }
  0xce   : > { %v711_v32 = vsel %vm710_vm7, %v703_v27, %v705_v29  ;;  %v788_v33 = vsel %vm787_vm8, %v780_v31, %v782_v24 }
  0xcf   : > { %v718_v34 = vsel %vm282_vm0, %v711_v32, 0  ;;  %v795_v37 = vsel %vm282_vm0, %v788_v33, 0 }
  0xd0   : > { %733 = vmatpush.bf16.msra.mxu2 %v718_v34  ;;  %v632_v35 = vpop.permute.xlu0 %631  ;;  %1083 = vmatmul.msk.bf16.vlgmr.msrb.gmra.mxu0 %vm278_vm1, %v1082_v30 }
  0xd1   : > { %v636_v36 = vsel %vm633_vm6, %v630_v13, %v632_v35 }
  0xd2   : > { %v647_v38 = vsel %vm282_vm0, %v636_v36, 0  ;;  %1084 = vmatmul.msk.bf16.vlgmr.msrb.gmra.mxu1 %vm278_vm1, %v1082_v30 }
  0xd3   : > { %1085 = vmatmul.msk.bf16.vlgmr.msrb.gmra.mxu2 %vm278_vm1, %v1082_v30  ;;  %682 = vmatpush.bf16.msra.mxu1 %v647_v38 }
  0xd5   : > { %v707_v39 = vpop.permute.xlu1 %706  ;;  %v863_v52 = vpop.permute.xlu2 %862 }
  0xd6   : > { %v712_v40 = vsel %vm710_vm7, %v705_v29, %v707_v39 }
  0xd7   : > { %810 = vmatpush.bf16.msrb.mxu1 %v795_v37  ;;  %v721_v41 = vsel %vm282_vm0, %v712_v40, 0 }
  0xd8   : > { %746 = vmatpush.bf16.msra.mxu3 %v721_v41  ;;  %v784_v42 = vpop.permute.xlu0 %783 }
  0xd9   : > { %v789_v44 = vsel %vm787_vm8, %v782_v24, %v784_v42 }
  0xda   : > { %v798_v45 = vsel %vm282_vm0, %v789_v44, 0 }
  0xdb   : > { %1092 = vmatmul.msk.bf16.vlgmr.msra.gmra.mxu3 %vm278_vm1, %v1090_v43  ;;  %823 = vmatpush.bf16.msrb.mxu2 %v798_v45 }
  0xdd   : > { %v709_v46 = vpop.permute.xlu1 %708 }
  0xde   : > { %v713_v47 = vsel %vm710_vm7, %v707_v39, %v709_v46 }
  0xdf   : > { %v724_v48 = vsel %vm282_vm0, %v713_v47, 0 }
  0xe0   : > { %759 = vmatpush.bf16.msrb.mxu0 %v724_v48  ;;  %v786_v49 = vpop.permute.xlu0 %785 }
  0xe1   : > { %v790_v50 = vsel %vm787_vm8, %v784_v42, %v786_v49  ;;  %1088 = vmatmul.msk.bf16.vlgmr.msra.gmra.mxu0 %vm278_vm1, %v1086_v28 }
  0xe2   : > { %v801_v51 = vsel %vm282_vm0, %v790_v50, 0  ;;  %1089 = vmatmul.msk.bf16.vlgmr.msra.gmra.mxu1 %vm278_vm1, %v1086_v28 }
  0xe3   : > { %1091 = vmatmul.msk.bf16.vlgmr.msra.gmra.mxu2 %vm278_vm1, %v1090_v43  ;;  %836 = vmatpush.bf16.msrb.mxu3 %v801_v51 }
  0xe5   : > { %v861_v53 = vpop.permute.xlu1 %860 }
  0xe6   : > { %v867_v54 = vsel %vm864_vm9, %v861_v53, %v863_v52 }
  0xe7   : > { %v878_v55 = vsel %vm282_vm0, %v867_v54, 0 }
  0xe8   : > { %913 = vmatpush.bf16.msra.mxu2 %v878_v55  ;;  %v857_v57 = vpop.permute.xlu0 %856 }
  0xeb   : > { %1097 = vmatmul.msk.bf16.vlgmr.msrb.gmra.mxu3 %vm278_vm1, %v1094_v56 }
  0xed   : > { %v859_v58 = vpop.permute.xlu1 %858 }
  0xee   : > { %v866_v59 = vsel %vm864_vm9, %v859_v58, %v861_v53  ;;  %v865_v60 = vsel %vm864_vm9, %v857_v57, %v859_v58 }
  0xef   : > { %v875_v61 = vsel %vm282_vm0, %v866_v59, 0  ;;  %v872_v62 = vsel %vm282_vm0, %v865_v60, 0  ;;  %v252_v60 = vld [vmem:[%s1483_s5] sm:$0x7] }
  0xf0   : > { %900 = vmatpush.bf16.msra.mxu1 %v875_v61  ;;  %887 = vmatpush.bf16.msra.mxu0 %v872_v62 }
  0xf1   : > { %1093 = vmatmul.msk.bf16.vlgmr.msrb.gmra.mxu0 %vm278_vm1, %v1090_v43 }
  0xf2   : > { %1095 = vmatmul.msk.bf16.vlgmr.msrb.gmra.mxu1 %vm278_vm1, %v1094_v56 }
  0xf3   : > { %1096 = vmatmul.msk.bf16.vlgmr.msrb.gmra.mxu2 %vm278_vm1, %v1094_v56 }
 0x101   : > { %1099 = vmatmul.msk.bf16.vlgmr.msra.gmra.mxu0 %vm278_vm1, %v1098_v63 }
 0x102   : > { %1100 = vmatmul.msk.bf16.vlgmr.msra.gmra.mxu1 %vm278_vm1, %v1098_v63 }
 0x103   : > { %1101 = vmatmul.msk.bf16.vlgmr.msra.gmra.mxu2 %vm278_vm1, %v1098_v63 }
 0x11d   : > { %v301_v2 = vpop.f32.mrf.mxu0  ;;  %v314_v3 = vpop.f32.mrf.mxu1 }
 0x11e   : > { %v354_v4 = vadd.f32 %v353_v0, %v301_v2 }
 0x125   : > { %v303_v6 = vpop.f32.mrf.mxu0  ;;  %v316_v7 = vpop.f32.mrf.mxu1 }
 0x126   : > { %v327_v5 = vpop.f32.mrf.mxu2  ;;  %v924_v6 = vperm.slane %v252_v60, 1 }
 0x12d   : > { %v366_v9 = vpop.f32.mrf.mxu0  ;;  %v440_v10 = vpop.f32.mrf.mxu3 }
 0x12e   : > { %v329_v8 = vpop.f32.mrf.mxu2  ;;  %v367_v11 = vadd.f32 %v366_v9, %v314_v3  ;;  %v379_v12 = vpop.f32.mrf.mxu1  ;;  %v923_v3 = vperm.slane %v252_v60, 0 }
 0x12f   : > { %v380_v13 = vadd.f32 %v379_v12, %v327_v5 }
 0x130   : > { %v458_v14 = vadd.f32 %v440_v10, %v367_v11 }
 0x135   : > { %v368_v17 = vpop.f32.mrf.mxu0  ;;  %v442_v18 = vpop.f32.mrf.mxu3 }
 0x136   : > { %v427_v15 = vpop.f32.mrf.mxu2  ;;  %v381_v19 = vpop.f32.mrf.mxu1 }
 0x137   : > { %v457_v16 = vadd.f32 %v427_v15, %v354_v4 }
 0x13d   : > { %v453_v21 = vpop.f32.mrf.mxu0  ;;  %v530_v22 = vpop.f32.mrf.mxu3 }
 0x13e   : > { %v429_v20 = vpop.f32.mrf.mxu2  ;;  %v459_v51 = vadd.f32 %v453_v21, %v380_v13 }
 0x13f   : > { %v504_v23 = vpop.f32.mrf.mxu1 }
 0x140   : > { %v534_v48 = vadd.f32 %v504_v23, %v457_v16  ;;  %v536_v58 = vadd.f32 %v530_v22, %v459_v51 }
 0x145   : > { %v455_v25 = vpop.f32.mrf.mxu0  ;;  %v532_v26 = vpop.f32.mrf.mxu3 }
 0x146   : > { %v517_v24 = vpop.f32.mrf.mxu2 }
 0x147   : > { %v506_v27 = vpop.f32.mrf.mxu1  ;;  %v535_v49 = vadd.f32 %v517_v24, %v458_v14  ;;  %v925_v14 = vperm.slane %v252_v60, 2 }
 0x14d   : > { %v581_v29 = vpop.f32.mrf.mxu0 }
 0x14e   : > { %v519_v28 = vpop.f32.mrf.mxu2  ;;  %v658_v30 = vpop.f32.mrf.mxu3  ;;  %v611_v52 = vadd.f32 %v581_v29, %v534_v48 }
 0x14f   : > { %v594_v31 = vpop.f32.mrf.mxu1  ;;  %v1232_v28 = vmov 0  }
 0x150   : > { %v612_v53 = vadd.f32 %v594_v31, %v535_v49  ;;  %v688_v59 = vadd.f32 %v658_v30, %v611_v52  ;;  %1156 = vset.pattern.permute.xlu1 %v1232_v28  ;;  %1157 = vset.pattern.permute.xlu0 %v1232_v28 }
 0x155   : > { %v583_v33 = vpop.f32.mrf.mxu0 }
 0x156   : > { %v607_v32 = vpop.f32.mrf.mxu2  ;;  %v660_v34 = vpop.f32.mrf.mxu3 }
 0x157   : > { %v596_v35 = vpop.f32.mrf.mxu1  ;;  %v613_v61 = vadd.f32 %v607_v32, %v536_v58 }
 0x15e   : > { %v609_v36 = vpop.f32.mrf.mxu2  ;;  %v671_v37 = vpop.f32.mrf.mxu0 }
 0x15f   : > { %v748_v38 = vpop.f32.mrf.mxu3  ;;  %v684_v39 = vpop.f32.mrf.mxu1  ;;  %v689_v57 = vadd.f32 %v671_v37, %v612_v53 }
 0x160   : > { %v690_v1 = vadd.f32 %v684_v39, %v613_v61 }
 0x161   : > { %v766_v63 = vadd.f32 %v748_v38, %v689_v57 }
 0x166   : > { %v735_v40 = vpop.f32.mrf.mxu2  ;;  %v673_v41 = vpop.f32.mrf.mxu0 }
 0x167   : > { %v750_v42 = vpop.f32.mrf.mxu3  ;;  %v686_v43 = vpop.f32.mrf.mxu1  ;;  %v765_v62 = vadd.f32 %v735_v40, %v688_v59  ;;  %v947_v41 = vld [vmem:[%s1481_s3] sm:$0xff] }
 0x16e   : > { %v737_v44 = vpop.f32.mrf.mxu2  ;;  %v761_v45 = vpop.f32.mrf.mxu0 }
 0x16f   : > { %v838_v46 = vpop.f32.mrf.mxu3  ;;  %v812_v47 = vpop.f32.mrf.mxu1  ;;  %v767_v7 = vadd.f32 %v761_v45, %v690_v1 }
 0x170   : > { %v842_v2 = vadd.f32 %v812_v47, %v765_v62 }
 0x171   : > { %v844_v13 = vadd.f32 %v838_v46, %v767_v7  ;;  %v960_v46 = vld [vmem:[%s1482_s4] sm:$0xff] }
 0x176   : > { %v825_v50 = vpop.f32.mrf.mxu2  ;;  %v763_v54 = vpop.f32.mrf.mxu0 }
 0x177   : > { %v840_v55 = vpop.f32.mrf.mxu3  ;;  %v814_v56 = vpop.f32.mrf.mxu1  ;;  %v843_v4 = vadd.f32 %v825_v50, %v766_v63 }
 0x17e   : > { %v827_v0 = vpop.f32.mrf.mxu2  ;;  %v889_v5 = vpop.f32.mrf.mxu0 }
 0x17f   : > { %v919_v8 = vadd.f32 %v889_v5, %v842_v2  ;;  %v902_v9 = vpop.f32.mrf.mxu1 }
 0x180   : > { %v920_v10 = vadd.f32 %v902_v9, %v843_v4 }
 0x181   : > { %v929_v11 = vmul.f32 %v923_v3, %v919_v8 }
 0x182   : > { %v930_v12 = vmul.f32 %v924_v6, %v920_v10 }
 0x183   : > { %v937_v16 = vmul.f32 %v929_v11, %v919_v8 }
 0x184   : > { %v938_v17 = vmul.f32 %v930_v12, %v920_v10  ;;  %v932_v22 = vadd.f32 %v930_v12, %v929_v11 }
 0x186   : > { %v915_v15 = vpop.f32.mrf.mxu2  ;;  %v891_v19 = vpop.f32.mrf.mxu0  ;;  %v940_v25 = vadd.f32 %v938_v17, %v937_v16 }
 0x187   : > { %v921_v18 = vadd.f32 %v915_v15, %v844_v13  ;;  %v904_v20 = vpop.f32.mrf.mxu1 }
 0x189   : > { %v931_v21 = vmul.f32 %v925_v14, %v921_v18 }
 0x18b   : > { %v933_v23 = vadd.f32 %v932_v22, %v931_v21  ;;  %v939_v24 = vmul.f32 %v931_v21, %v921_v18 }
 0x18d   : > { %934 = vadd.xlane.f32.xlu2 %v933_v23  ;;  %v941_v26 = vadd.f32 %v940_v25, %v939_v24 }
 0x18e   : > { %v917_v27 = vpop.f32.mrf.mxu2 }
 0x18f   : > { %942 = vadd.xlane.f32.xlu0 %v941_v26 }
 0x200   : > { %v935_v29 = vpop.xlane.xlu2 %934 }
 0x201   : > { %v936_v30 = vmul.f32 0.00390625, %v935_v29 }
 0x202   : > { %v943_v31 = vpop.xlane.xlu0 %942 }
 0x203   : > { %v945_v32 = vmul.f32 %v936_v30, %v936_v30  ;;  %v944_v33 = vmul.f32 0.00390625, %v943_v31 }
 0x205   : > { %v946_v34 = vsub.f32 %v944_v33, %v945_v32 }
 0x207   : > { %v948_v35 = vadd.f32 1e-05, %v946_v34 }
 0x209   : > { %1158 = vrsqrt.f32 %v948_v35  ;;  %vm955_vm11 = vweird.f32 %v948_v35 }
 0x20f   : > { %v1159_v36 = vpop.eup %1158 }
 0x210   : > { %v950_v37 = vmul.f32 %v1159_v36, %v948_v35  ;;  %vm956_vm10 = vweird.f32 %v1159_v36 }
 0x211   : > { %vm957_vm12 = vmor %vm955_vm11, %vm956_vm10 }
 0x212   : > { %v951_v38 = vmul.f32 %v1159_v36, %v950_v37 }
 0x214   : > { %v952_v39 = vmul.f32 0.5, %v951_v38 }
 0x216   : > { %v953_v40 = vsub.f32 1.5, %v952_v39 }
 0x218   : > { %v954_v42 = vmul.f32 %v1159_v36, %v953_v40 }
 0x21a   : > { %v958_v43 = vsel %vm957_vm12, %v1159_v36, %v954_v42 }
 0x21b   : > { %v959_v44 = vmul.f32 %v958_v43, %v947_v41 }
 0x21d   : > { %965 = vperm.xlu1 %1156, %v959_v44   ;;  %v961_v45 = vmul.f32 %v959_v44, %v936_v30 }
 0x21f   : > { %v962_v47 = vsub.f32 %v960_v46, %v961_v45 }
 0x225   : > { %973 = vperm.xlu1 %1156, %v962_v47  }
 0x28f   : > { %v966_v48 = vpop.permute.xlu1 %965 }
 0x290   : > { %v968_v49 = vmul.f32 %v966_v48, %v919_v8  ;;  %v969_v50 = vmul.f32 %v966_v48, %v920_v10  ;;  %v970_v51 = vmul.f32 %v966_v48, %v921_v18 }
 0x297   : > { %v974_v52 = vpop.permute.xlu1 %973 }
 0x298   : > { %v976_v53 = vadd.f32 %v974_v52, %v968_v49  ;;  %v977_v54 = vadd.f32 %v974_v52, %v969_v50  ;;  %v978_v55 = vadd.f32 %v974_v52, %v970_v51 }
 0x29a   : > { %v979_v56 = vmax.f32 %v976_v53, 0.0  ;;  %v980_v57 = vmax.f32 %v977_v54, 0.0  ;;  %v981_v58 = vmax.f32 %v978_v55, 0.0 }
 0x29c   : > { %982 = vst [vmem:[%s244_s19] sm:$0xff] %v979_v56 }
 0x29d   : > { %983 = vst [vmem:[%s244_s19 + $0x8] sm:$0xff] %v980_v57 }
 0x29e   : > { %984 = vst [vmem:[%s244_s19 + $0x10] sm:$0xff] %v981_v58 }
 0x29f   : > { %1187 = shalt.err (!%p1184_p3)
}
 0x2a0   : > { %1108 = dma.vmem_to_hbm [thread:$0]  (%p1306_p5), %s1000_s20, 384, %s1002_s25, %s986_s24  }
 0x2a1 PF: > { %p1114_p4 = scmp.ge.s32.totalorder %s1222_s2, 2  ;;  %s1013_s13 = sand.u32 1, %s1210_s21  }
 0x2a2   : > { %s1014_s14 = scalar_lea.sflag [#allocation3], %s1013_s13 }
 0x2a3   : > { %p1111_p7 = pnand %p1114_p4, %p1310_p6 }
 0x2a5   : > { %p1112_p8 = pneg %p1111_p7 }
 0x2a7   : > { %1205 = dma.done.wait (%p1112_p8), %s1014_s14, 384  }
 0x2a8   : > { %1207 = vsyncadd (%p1112_p8), %s1014_s14, 4294966912  ;;  %p16_p9 = scmp.ge.s32.totalorder %s1293_s26, 4   ;;  %s1487_s21 = smov %s1214_s22 }
 0x2a9   : > { %s1488_s22 = smov %s1218_s23  ;;  %s1489_s23 = smov %s1304_s29 }
 0x2aa   : > { %s1490_s2 = smov %s1293_s26  ;;  %18 = sbr.rel (!%p16_p9) target bundleno = 3 (0x3), region = 87 }
 0x2af   :  { %1020 = vsyncpa [#allocation3], 1 }
 0x2b0   :  { %1022 = vsyncpa [#allocation3 + $0x1], 1 }

</bundles_post_ra>
